<compile_context>
chip_gen: v5e
topology: v5e:2x2
jax: 0.10.0
libtpu: 0.0.40
codegen_flags: <defaults>
</compile_context>

<pallas_src>
import functools
import math

import jax
import jax.numpy as jnp
from jax.experimental import pallas as pl
from jax.experimental.pallas import tpu as pltpu


def mha_kernel(num_heads, n_q, z_ref, code_ref, wqkv_ref, wo_ref, o_ref):
    H = num_heads
    n_tot, D = z_ref.shape              # n_tot = n_q + n_k (all tokens)
    dh = wqkv_ref.shape[1] // 3

    z = z_ref[...]                       # (n_tot, D) f32
    # Broadcast token rows across a leading head axis so every matmul below
    # is a head-batched dot_general with a single leading batch dim (no .T).
    zh = jnp.broadcast_to(z, (H, n_tot, D))

    def hdot(lhs, rhs, contract):
        return jax.lax.dot_general(
            lhs, rhs,
            dimension_numbers=(contract, ((0,), (0,))),
            preferred_element_type=jnp.float32)

    # Fused Q/K/V projection: contract the hidden dim of all tokens with the
    # stacked per-head weight block (PyTorch Linear is x @ W.T, W is (out,in)).
    proj = hdot(zh, wqkv_ref[...], ((2,), (2,)))   # (H, n_tot, 3*dh)

    # Static slices: rows split queries/keys (n_q is a sublane multiple),
    # lanes split q/k/v (all 3*dh lanes live in one vreg -> free).
    q = proj[:, :n_q, 0:dh]                        # (H, n_q, dh), scale folded
    k = proj[:, n_q:, dh:2 * dh]                   # (H, n_k, dh)
    v = proj[:, n_q:, 2 * dh:3 * dh]               # (H, n_k, dh)

    # Scores for every (query token, key token) pair, all heads at once.
    scores = hdot(q, k, ((2,), (2,)))              # (H, n_q, n_k)

    # Batch-size-independent masking: one precomputed (n_q, n_k) code.
    #   2 -> keep score; 1 -> same batch, past valid_len (-1e6, as in d2l);
    #   0 -> cross-batch pair (doesn't exist in the reference -> exp == 0).
    code = code_ref[...]                           # (n_q, n_k) int32
    fill = jnp.where(code == 1, jnp.float32(-1e6), jnp.float32(-1e30))
    masked = jnp.where(code == 2, scores, fill)    # broadcasts over heads

    # Numerically-stable softmax over the key axis (f32 on VPU/EUP/XLU).
    m = jnp.max(masked, axis=-1, keepdims=True)
    p = jnp.exp(masked - m)
    denom = jnp.sum(p, axis=-1, keepdims=True)
    attn = p * pl.reciprocal(denom, approx=False)  # EUP slot, full precision

    ctx = hdot(attn, v, ((2,), (1,)))              # (H, n_q, dh)

    # Output projection: ctx_concat @ Wo.T == sum_h ctx_h @ Wo_h with
    # Wo_h pre-reshaped in the wrapper; the head "concat" is fused into a
    # per-head matmul + cheap VPU sum over the leading head axis.
    out_h = hdot(ctx, wo_ref[...], ((2,), (1,)))   # (H, n_q, D)
    o_ref[...] = jnp.sum(out_h, axis=0).astype(o_ref.dtype)


def multi_head_attention(x, y, valid_lens, wq, wk, wv, wo, num_heads):
    B, Tq, D = x.shape
    Tk = y.shape[1]
    H = num_heads
    assert D % H == 0
    dh = D // H
    n_q, n_k = B * Tq, B * Tk
    scale = 1.0 / math.sqrt(dh)

    # One-time layout plumbing outside the kernel (contiguous reshapes of the
    # activations, reshape/stack of the tiny weights).
    z = jnp.concatenate([x.reshape(n_q, D), y.reshape(n_k, D)], axis=0)

    wq_r = wq.reshape(H, dh, D) * jnp.float32(scale)   # fold 1/sqrt(dh) once
    wk_r = wk.reshape(H, dh, D)
    wv_r = wv.reshape(H, dh, D)
    wqkv = jnp.concatenate([wq_r, wk_r, wv_r], axis=1)  # (H, 3*dh, D)
    wo_r = wo.T.reshape(H, dh, D)                       # Wo[e, h*dh+d] -> [h, d, e]

    # Precompute the (n_q, n_k) mask code (batch-count independent in-kernel).
    vl = valid_lens.astype(jnp.int32)
    batch_q = jnp.repeat(jnp.arange(B, dtype=jnp.int32), Tq)       # (n_q,)
    batch_k = jnp.repeat(jnp.arange(B, dtype=jnp.int32), Tk)       # (n_k,)
    pos_k = jnp.tile(jnp.arange(Tk, dtype=jnp.int32), B)           # (n_k,)
    valid_k = pos_k < jnp.repeat(vl, Tk)                           # (n_k,)
    same = batch_q[:, None] == batch_k[None, :]                    # (n_q, n_k)
    code = same.astype(jnp.int32) + (same & valid_k[None, :]).astype(jnp.int32)

    kernel = functools.partial(mha_kernel, H, n_q)

    def full_spec(shape):
        n = len(shape)
        return pl.BlockSpec(shape, lambda i, _n=n: (0,) * _n)

    out2 = pl.pallas_call(
        kernel,
        out_shape=jax.ShapeDtypeStruct((n_q, D), x.dtype),
        grid_spec=pltpu.PrefetchScalarGridSpec(
            num_scalar_prefetch=0,
            grid=(1,),                   # whole (tiny) problem in one step
            in_specs=[
                full_spec((n_q + n_k, D)),
                full_spec((n_q, n_k)),
                full_spec((H, 3 * dh, D)),
                full_spec((H, dh, D)),
            ],
            out_specs=full_spec((n_q, D)),
        ),
        compiler_params=pltpu.CompilerParams(
            dimension_semantics=("arbitrary",)),
    )(z, code, wqkv, wo_r)
    return out2.reshape(B, Tq, D)


def reference(x, y, valid_lens, wq, wk, wv, wo, num_heads):
    """Pure-JAX mirror of the PyTorch forward pass (eval mode)."""
    B, Tq, D = x.shape
    Tk = y.shape[1]
    dh = D // num_heads

    def split(t):
        Bt, T, _ = t.shape
        return t.reshape(Bt, T, num_heads, dh).transpose(0, 2, 1, 3)

    qh = split(x @ wq.T)
    kh = split(y @ wk.T)
    vh = split(y @ wv.T)
    scores = jnp.einsum('bhqd,bhkd->bhqk', qh, kh) / math.sqrt(dh)
    mask = jnp.arange(Tk)[None, None, None, :] < valid_lens[:, None, None, None]
    scores = jnp.where(mask, scores, -1000000.0)
    attn = jax.nn.softmax(scores, axis=-1)
    ctx = jnp.einsum('bhqk,bhkd->bhqd', attn, vh)
    ctx = ctx.transpose(0, 2, 1, 3).reshape(B, Tq, D)
    return ctx @ wo.T


if __name__ == "__main__":
    batch, num_queries, num_kvpairs = 2, 8, 16
    num_hiddens, num_heads = 32, 4

    key = jax.random.PRNGKey(0)
    kx, ky, k1, k2, k3, k4 = jax.random.split(key, 6)

    X = jax.random.normal(kx, (batch, num_queries, num_hiddens), jnp.float32)
    Y = jax.random.normal(ky, (batch, num_kvpairs, num_hiddens), jnp.float32)
    valid_lens = jnp.array([3, 13], dtype=jnp.int32)

    # Deterministic synthetic weights, PyTorch-Linear layout (out, in).
    bound = 1.0 / math.sqrt(num_hiddens)
    W_q = jax.random.uniform(k1, (num_hiddens, num_hiddens), jnp.float32, -bound, bound)
    W_k = jax.random.uniform(k2, (num_hiddens, num_hiddens), jnp.float32, -bound, bound)
    W_v = jax.random.uniform(k3, (num_hiddens, num_hiddens), jnp.float32, -bound, bound)
    W_o = jax.random.uniform(k4, (num_hiddens, num_hiddens), jnp.float32, -bound, bound)

    out = multi_head_attention(X, Y, valid_lens, W_q, W_k, W_v, W_o, num_heads)
    out = jax.block_until_ready(out)

    ref = reference(X, Y, valid_lens, W_q, W_k, W_v, W_o, num_heads)
    assert out.shape == (batch, num_queries, num_hiddens)
    # Tolerance covers MXU-vs-XLA f32 matmul rounding differences at default
    # precision; the softmax reciprocal itself is now full precision.
    assert jnp.allclose(out, ref, atol=2e-3, rtol=2e-3), "mismatch vs reference"

    print("KERNEL_OK")
</pallas_src>

<mosaic_0001>
module attributes {stable_mosaic.version = 11 : i64} {
  func.func @mha_kernel(%arg0: i32, %arg1: memref<48x32xf32, #tpu.memory_space<vmem>>, %arg2: memref<16x32xi32, #tpu.memory_space<vmem>>, %arg3: memref<4x24x32xf32, #tpu.memory_space<vmem>>, %arg4: memref<4x8x32xf32, #tpu.memory_space<vmem>>, %arg5: memref<16x32xf32, #tpu.memory_space<vmem>>) attributes {dimension_semantics = [#tpu.dimension_semantics<arbitrary>], iteration_bounds = array<i64: 1>, scalar_prefetch = 0 : i64, scratch_operands = 0 : i64, tpu.core_type = #tpu.core_type<tc>, window_params = [{pipeline_mode = #tpu.pipeline_mode<synchronous>, transform_indices = @transform_0, window_bounds = array<i64: 48, 32>}, {pipeline_mode = #tpu.pipeline_mode<synchronous>, transform_indices = @transform_1, window_bounds = array<i64: 16, 32>}, {pipeline_mode = #tpu.pipeline_mode<synchronous>, transform_indices = @transform_2, window_bounds = array<i64: 4, 24, 32>}, {pipeline_mode = #tpu.pipeline_mode<synchronous>, transform_indices = @transform_3, window_bounds = array<i64: 4, 8, 32>}, {pipeline_mode = #tpu.pipeline_mode<synchronous>, transform_indices = @transform_4, window_bounds = array<i64: 16, 32>}]} {
    %c0 = arith.constant 0 : index
    %c0_0 = arith.constant 0 : index
    %0 = vector.load %arg1[%c0, %c0_0] : memref<48x32xf32, #tpu.memory_space<vmem>>, vector<48x32xf32>
    %1 = vector.shape_cast %0 : vector<48x32xf32> to vector<1x48x32xf32>
    %2 = vector.broadcast %1 : vector<1x48x32xf32> to vector<4x48x32xf32>
    %c0_1 = arith.constant 0 : index
    %c0_2 = arith.constant 0 : index
    %c0_3 = arith.constant 0 : index
    %3 = vector.load %arg3[%c0_1, %c0_2, %c0_3] : memref<4x24x32xf32, #tpu.memory_space<vmem>>, vector<4x24x32xf32>
    %cst = arith.constant dense<0.000000e+00> : vector<4x48x24xf32>
    %4 = tpu.matmul %2, %3, %cst {dimension_numbers = #tpu.dot_dimension_numbers<[2], [2], [1], [1], [0, 0, 0, 1, 1, 1], [0], [0]>} : vector<4x48x32xf32>, vector<4x24x32xf32>, vector<4x48x24xf32> -> vector<4x48x24xf32>
    %5 = vector.extract_strided_slice %4 {offsets = [0, 0, 0], sizes = [4, 16, 8], strides = [1, 1, 1]} : vector<4x48x24xf32> to vector<4x16x8xf32>
    %6 = vector.extract_strided_slice %4 {offsets = [0, 16, 8], sizes = [4, 32, 8], strides = [1, 1, 1]} : vector<4x48x24xf32> to vector<4x32x8xf32>
    %7 = vector.extract_strided_slice %4 {offsets = [0, 16, 16], sizes = [4, 32, 8], strides = [1, 1, 1]} : vector<4x48x24xf32> to vector<4x32x8xf32>
    %cst_4 = arith.constant dense<0.000000e+00> : vector<4x16x32xf32>
    %8 = tpu.matmul %5, %6, %cst_4 {dimension_numbers = #tpu.dot_dimension_numbers<[2], [2], [1], [1], [0, 0, 0, 1, 1, 1], [0], [0]>} : vector<4x16x8xf32>, vector<4x32x8xf32>, vector<4x16x32xf32> -> vector<4x16x32xf32>
    %c0_5 = arith.constant 0 : index
    %c0_6 = arith.constant 0 : index
    %9 = vector.load %arg2[%c0_5, %c0_6] : memref<16x32xi32, #tpu.memory_space<vmem>>, vector<16x32xi32>
    %c1_i32 = arith.constant 1 : i32
    %10 = vector.broadcast %c1_i32 : i32 to vector<16x32xi32>
    %11 = arith.cmpi eq, %9, %10 : vector<16x32xi32>
    %cst_7 = arith.constant -1.000000e+06 : f32
    %cst_8 = arith.constant -1.000000e+30 : f32
    %12 = vector.broadcast %cst_7 : f32 to vector<16x32xf32>
    %13 = vector.broadcast %cst_8 : f32 to vector<16x32xf32>
    %14 = arith.select %11, %12, %13 : vector<16x32xi1>, vector<16x32xf32>
    %c2_i32 = arith.constant 2 : i32
    %15 = vector.broadcast %c2_i32 : i32 to vector<16x32xi32>
    %16 = arith.cmpi eq, %9, %15 : vector<16x32xi32>
    %17 = vector.shape_cast %16 : vector<16x32xi1> to vector<1x16x32xi1>
    %18 = vector.broadcast %17 : vector<1x16x32xi1> to vector<4x16x32xi1>
    %19 = vector.shape_cast %14 : vector<16x32xf32> to vector<1x16x32xf32>
    %20 = vector.broadcast %19 : vector<1x16x32xf32> to vector<4x16x32xf32>
    %21 = arith.select %18, %8, %20 : vector<4x16x32xi1>, vector<4x16x32xf32>
    %cst_9 = arith.constant dense<0xFF800000> : vector<4x16xf32>
    %22 = vector.multi_reduction <maximumf>, %21, %cst_9 [2] : vector<4x16x32xf32> to vector<4x16xf32>
    %23 = vector.shape_cast %22 : vector<4x16xf32> to vector<4x16x1xf32>
    %24 = vector.broadcast %23 : vector<4x16x1xf32> to vector<4x16x32xf32>
    %25 = arith.subf %21, %24 : vector<4x16x32xf32>
    %26 = math.exp %25 : vector<4x16x32xf32>
    %cst_10 = arith.constant dense<0.000000e+00> : vector<4x16xf32>
    %27 = vector.multi_reduction <add>, %26, %cst_10 [2] : vector<4x16x32xf32> to vector<4x16xf32>
    %28 = vector.shape_cast %27 : vector<4x16xf32> to vector<4x16x1xf32>
    %29 = tpu.reciprocal %28 : vector<4x16x1xf32> -> vector<4x16x1xf32>
    %30 = vector.broadcast %29 : vector<4x16x1xf32> to vector<4x16x32xf32>
    %31 = arith.mulf %26, %30 : vector<4x16x32xf32>
    %cst_11 = arith.constant dense<0.000000e+00> : vector<4x16x8xf32>
    %32 = tpu.matmul %31, %7, %cst_11 {dimension_numbers = #tpu.dot_dimension_numbers<[2], [1], [1], [2], [0, 0, 0, 1, 1, 2], [0], [0]>} : vector<4x16x32xf32>, vector<4x32x8xf32>, vector<4x16x8xf32> -> vector<4x16x8xf32>
    %c0_12 = arith.constant 0 : index
    %c0_13 = arith.constant 0 : index
    %c0_14 = arith.constant 0 : index
    %33 = vector.load %arg4[%c0_12, %c0_13, %c0_14] : memref<4x8x32xf32, #tpu.memory_space<vmem>>, vector<4x8x32xf32>
    %cst_15 = arith.constant dense<0.000000e+00> : vector<4x16x32xf32>
    %34 = tpu.matmul %32, %33, %cst_15 {dimension_numbers = #tpu.dot_dimension_numbers<[2], [1], [1], [2], [0, 0, 0, 1, 1, 2], [0], [0]>} : vector<4x16x8xf32>, vector<4x8x32xf32>, vector<4x16x32xf32> -> vector<4x16x32xf32>
    %cst_16 = arith.constant dense<0.000000e+00> : vector<16x32xf32>
    %35 = vector.multi_reduction <add>, %34, %cst_16 [0] : vector<4x16x32xf32> to vector<16x32xf32>
    %c0_17 = arith.constant 0 : index
    %c0_18 = arith.constant 0 : index
    %36 = vector.load %arg5[%c0_17, %c0_18] : memref<16x32xf32, #tpu.memory_space<vmem>>, vector<16x32xf32>
    tpu.vector_store %arg5[%c0_17, %c0_18], %35 {strides = array<i32>} : memref<16x32xf32, #tpu.memory_space<vmem>>, vector<16x32xf32>,
    return
  }
  func.func @transform_0(%arg0: i32) -> (i32, i32) {
    %c0_i32 = arith.constant 0 : i32
    %c0_i32_0 = arith.constant 0 : i32
    %c0_i32_1 = arith.constant 0 : i32
    return %c0_i32, %c0_i32_0 : i32, i32
  }
  func.func @transform_1(%arg0: i32) -> (i32, i32) {
    %c0_i32 = arith.constant 0 : i32
    %c0_i32_0 = arith.constant 0 : i32
    %c0_i32_1 = arith.constant 0 : i32
    return %c0_i32, %c0_i32_0 : i32, i32
  }
  func.func @transform_2(%arg0: i32) -> (i32, i32, i32) {
    %c0_i32 = arith.constant 0 : i32
    %c0_i32_0 = arith.constant 0 : i32
    %c0_i32_1 = arith.constant 0 : i32
    %c0_i32_2 = arith.constant 0 : i32
    return %c0_i32, %c0_i32_0, %c0_i32_1 : i32, i32, i32
  }
  func.func @transform_3(%arg0: i32) -> (i32, i32, i32) {
    %c0_i32 = arith.constant 0 : i32
    %c0_i32_0 = arith.constant 0 : i32
    %c0_i32_1 = arith.constant 0 : i32
    %c0_i32_2 = arith.constant 0 : i32
    return %c0_i32, %c0_i32_0, %c0_i32_1 : i32, i32, i32
  }
  func.func @transform_4(%arg0: i32) -> (i32, i32) {
    %c0_i32 = arith.constant 0 : i32
    %c0_i32_0 = arith.constant 0 : i32
    %c0_i32_1 = arith.constant 0 : i32
    return %c0_i32, %c0_i32_0 : i32, i32
  }
}

</mosaic_0001>

<bundles_post_ra>
// kernel: tpu_custom_call.1
= control target key start
LH: loop header
LB: loop body
LE: loop exit
PB: predicated region body
PF: predicated region fallthrough
CT: control target
= control target key end

     0   :  { %9 = vsyncpa [#allocation3], 0  ;;  %s1615_s0 = inlined_call_operand.vmem [shape: f32[48,32], index: 0, kind: input, shape index: {}]   ;;  %s1616_s1 = inlined_call_operand.vmem [shape: s32[16,32], index: 1, kind: input, shape index: {}]   ;;  %s1617_s2 = inlined_call_operand.hbm [shape: f32[4,24,32], index: 2, kind: input, shape index: {}]   ;;  %s1618_s3 = inlined_call_operand.vmem [shape: f32[4,8,32], index: 3, kind: input, shape index: {}]   ;;  %s1619_s4 = inlined_call_operand.hbm [shape: f32[16,32], index: 4, kind: output, shape index: {}]  }
   0x1   :  { %10 = vsyncpa [#allocation4], 0  ;;  %s19_s17 = sshll.u32 %s1617_s2, 4  ;;  %s1182_s18 = smov [#allocation2]   ;;  %s20_s17 = int_to_ptr.hbm [resolvable:$true] %s19_s17 }
   0x2   :  { %s21_s19 = sshll.u32 %s1182_s18, 4  ;;  %s1183_s20 = smov 128   ;;  %s22_s19 = int_to_ptr.vmem [resolvable:$true] %s21_s19 }
   0x3   :  { %s1184_s21 = smov 8  }
   0x4   :  { %27 = dma.hbm_to_vmem [thread:$0]  %s20_s17, 1536, %s22_s19, [#allocation3], %s1183_s20, %s1183_s20, %s1184_s21  }
   0x5   :  { %1178 = dma.done.wait [#allocation3], 1536  }
   0x6   :  { %1179 = vsyncadd [#allocation3], 4294965760  ;;  %vm52_vm0 = vcmask 261120   ;;  %v48_v0 = vld [vmem:[#allocation2 + $0x40] sm:$0xff]  ;;  %v51_v1 = vld [vmem:[#allocation2 + $0x58] sm:$0xff]  ;;  %vm259_vm1 = vcmask 64512  }
   0x7   :  { %993 = vmatpush.xpose.msk.msra.mxu2 %vm52_vm0, %v48_v0  ;;  %1002 = vmatpush.xpose.msk.msra.mxu3 %vm52_vm0, %v51_v1  ;;  %v47_v2 = vld [vmem:[#allocation2 + $0x38] sm:$0xff]  ;;  %v50_v3 = vld [vmem:[#allocation2 + $0x50] sm:$0xff]  ;;  %v41_v5 = vld [vmem:[#allocation2 + $0x8] sm:$0xff]  ;;  %v1186_v0 = vmov -1e+30   ;;  %s962_s23 = sshll.u32 %s1619_s4, 4  ;;  %s963_s23 = int_to_ptr.hbm [resolvable:$true] %s962_s23 }
   0x8   :  { %v42_v4 = vld [vmem:[#allocation2 + $0x10] sm:$0xff]  ;;  %v45_v6 = vld [vmem:[#allocation2 + $0x28] sm:$0xff]  ;;  %v44_v9 = vld [vmem:[#allocation2 + $0x20] sm:$0xff] }
   0x9   :  { %975 = vmatpush.xpose.msk.msra.mxu0 %vm52_vm0, %v42_v4  ;;  %v46_v7 = vld [vmem:[#allocation2 + $0x30] sm:$0xff]  ;;  %v49_v8 = vld [vmem:[#allocation2 + $0x48] sm:$0xff]  ;;  %984 = vmatpush.xpose.msk.msra.mxu1 %vm52_vm0, %v45_v6  ;;  %v40_v10 = vld [vmem:[#allocation2] sm:$0xff] }
   0xa   :  { %v34_v11 = vld [vmem:[%s1615_s0] sm:$0xff]  ;;  %v43_v12 = vld [vmem:[#allocation2 + $0x18] sm:$0xff]  ;;  %v35_v13 = vld [vmem:[%s1615_s0 + $0x8] sm:$0xff] }
   0xb   :  { %994 = vmatpush.xpose.msk.msra.mxu2 %vm52_vm0, %v47_v2  ;;  %1003 = vmatpush.xpose.msk.msra.mxu3 %vm52_vm0, %v50_v3  ;;  %v36_v14 = vld [vmem:[%s1615_s0 + $0x10] sm:$0xff]  ;;  %v37_v15 = vld [vmem:[%s1615_s0 + $0x18] sm:$0xff]  ;;  %v38_v16 = vld [vmem:[%s1615_s0 + $0x20] sm:$0xff] }
   0xc   :  { %v39_v17 = vld [vmem:[%s1615_s0 + $0x28] sm:$0xff]  ;;  %s1185_s0 = smov 120   ;;  %v444_v62 = vld [vmem:[%s1616_s1] sm:$0xff] }
   0xd   :  { %976 = vmatpush.xpose.msk.msra.mxu0 %vm52_vm0, %v41_v5  ;;  %985 = vmatpush.xpose.msk.msra.mxu1 %vm52_vm0, %v44_v9  ;;  %vm446_vm2 = vcmp.eq.s32.totalorder %v444_v62, 1  ;;  %vm450_vm3 = vcmp.eq.s32.totalorder %v444_v62, 2  ;;  %v445_v6 = vld [vmem:[%s1616_s1 + $0x8] sm:$0xff]  ;;  %s1187_s1 = smov 112  }
   0xe   :  { %v448_v1 = vsel %vm446_vm2, -1000000.0, %v1186_v0  ;;  %vm447_vm4 = vcmp.eq.s32.totalorder %v445_v6, 1  ;;  %vm451_vm5 = vcmp.eq.s32.totalorder %v445_v6, 2 }
   0xf   :  { %995 = vmatpush.xpose.msk.msra.mxu2 %vm52_vm0, %v46_v7  ;;  %1004 = vmatpush.xpose.msk.msra.mxu3 %vm52_vm0, %v49_v8 }
  0x11   :  { %977 = vmatpush.xpose.msk.msra.mxu0 %vm52_vm0, %v40_v10  ;;  %986 = vmatpush.xpose.msk.msra.mxu1 %vm52_vm0, %v43_v12  ;;  %v449_v12 = vsel %vm447_vm4, -1000000.0, %v1186_v0 }
  0x12   :  { %996 = vmatmul.msk.f32.vlgmr.msra.gmra.mxu2 %vm52_vm0, %v34_v11  ;;  %1005 = vmatmul.msk.f32.vlgmr.msra.gmra.mxu3 %vm52_vm0, %v34_v11 }
  0x14   :  { %978 = vmatmul.msk.f32.vlgmr.msra.gmra.mxu0 %vm52_vm0, %v34_v11  ;;  %987 = vmatmul.msk.f32.vlgmr.msra.gmra.mxu1 %vm52_vm0, %v34_v11 }
  0x1a   :  { %997 = vmatmul.msk.f32.gmra.mxu2 %vm52_vm0, %v35_v13  ;;  %1006 = vmatmul.msk.f32.gmra.mxu3 %vm52_vm0, %v35_v13 }
  0x1c   :  { %979 = vmatmul.msk.f32.gmra.mxu0 %vm52_vm0, %v35_v13  ;;  %988 = vmatmul.msk.f32.gmra.mxu1 %vm52_vm0, %v35_v13 }
  0x22   :  { %998 = vmatmul.msk.f32.gmra.mxu2 %vm52_vm0, %v36_v14  ;;  %1007 = vmatmul.msk.f32.gmra.mxu3 %vm52_vm0, %v36_v14 }
  0x24   :  { %980 = vmatmul.msk.f32.gmra.mxu0 %vm52_vm0, %v36_v14  ;;  %989 = vmatmul.msk.f32.gmra.mxu1 %vm52_vm0, %v36_v14 }
  0x2a   :  { %999 = vmatmul.msk.f32.gmra.mxu2 %vm52_vm0, %v37_v15  ;;  %1008 = vmatmul.msk.f32.gmra.mxu3 %vm52_vm0, %v37_v15 }
  0x2c   :  { %981 = vmatmul.msk.f32.gmra.mxu0 %vm52_vm0, %v37_v15  ;;  %990 = vmatmul.msk.f32.gmra.mxu1 %vm52_vm0, %v37_v15 }
  0x32   :  { %1000 = vmatmul.msk.f32.gmra.mxu2 %vm52_vm0, %v38_v16  ;;  %1009 = vmatmul.msk.f32.gmra.mxu3 %vm52_vm0, %v38_v16 }
  0x34   :  { %982 = vmatmul.msk.f32.gmra.mxu0 %vm52_vm0, %v38_v16  ;;  %991 = vmatmul.msk.f32.gmra.mxu1 %vm52_vm0, %v38_v16 }
  0x3a   :  { %1001 = vmatmul.msk.f32.gmra.mxu2 %vm52_vm0, %v39_v17  ;;  %1010 = vmatmul.msk.f32.gmra.mxu3 %vm52_vm0, %v39_v17 }
  0x3c   :  { %983 = vmatmul.msk.f32.gmra.mxu0 %vm52_vm0, %v39_v17  ;;  %992 = vmatmul.msk.f32.gmra.mxu1 %vm52_vm0, %v39_v17 }
  0x91   :  { %v1274_v18 = vpop.f32.mrf.mxu0  ;;  %v1276_v19 = vpop.f32.mrf.mxu1 }
  0x95   :  { %v1278_v20 = vpop.f32.mrf.mxu2  ;;  %v1280_v21 = vpop.f32.mrf.mxu3 }
  0x99   :  { %v1282_v22 = vpop.f32.mrf.mxu0  ;;  %v1284_v23 = vpop.f32.mrf.mxu1 }
  0x9d   :  { %v1286_v24 = vpop.f32.mrf.mxu2  ;;  %v1288_v25 = vpop.f32.mrf.mxu3 }
  0xa1   :  { %v1290_v26 = vpop.f32.mrf.mxu0  ;;  %v1292_v27 = vpop.f32.mrf.mxu1 }
  0xa5   :  { %v1294_v28 = vpop.f32.mrf.mxu2  ;;  %v1296_v29 = vpop.f32.mrf.mxu3 }
  0xa9   :  { %v1298_v30 = vpop.f32.mrf.mxu0  ;;  %v1300_v31 = vpop.f32.mrf.mxu1 }
  0xaa   :  { %v1088_v34 = vpack.i.bf16 %v1300_v31, %v1298_v30 }
  0xad   :  { %v1302_v32 = vpop.f32.mrf.mxu2  ;;  %v1304_v33 = vpop.f32.mrf.mxu3 }
  0xae   :  { %v1073_v35 = vpack.i.bf16 %v1296_v29, %v1304_v33  ;;  %352 = vrot.lane.b32.xlu2 %v1302_v32, %s1185_s0 }
  0xb1   :  { %v1311_v36 = vpop.f32.mrf.mxu0  ;;  %v1313_v37 = vpop.f32.mrf.mxu1 }
  0xb2   :  { %v1083_v40 = vpack.i.bf16 %v1313_v37, %v1311_v36 }
  0xb5   :  { %v1315_v38 = vpop.f32.mrf.mxu2  ;;  %v1317_v39 = vpop.f32.mrf.mxu3 }
  0xb6   :  { %v1068_v41 = vpack.i.bf16 %v1294_v28, %v1317_v39  ;;  %401 = vrot.lane.b32.xlu2 %v1304_v33, %s1185_s0  ;;  %354 = vrot.lane.b32.xlu1 %v1315_v38, %s1185_s0 }
  0xb9   :  { %v1325_v42 = vpop.f32.mrf.mxu0  ;;  %v1340_v45 = vpop.f32.mrf.mxu1 }
  0xbd   :  { %v1327_v43 = vpop.f32.mrf.mxu2  ;;  %v1332_v44 = vpop.f32.mrf.mxu3 }
  0xbe   :  { %403 = vrot.lane.b32.xlu1 %v1317_v39, %s1185_s0  ;;  %356 = vrot.lane.b32.xlu0 %v1327_v43, %s1185_s0 }
  0xbf   :  { %257 = vrot.lane.b32.xlu2 %v1325_v42, %s1185_s0 }
  0xc6   :  { %399 = vrot.lane.b32.xlu1 %v1296_v29, %s1185_s0  ;;  %405 = vrot.lane.b32.xlu0 %v1332_v44, %s1185_s0 }
  0xc7   :  { %305 = vrot.lane.b32.xlu2 %v1313_v37, %s1185_s0 }
  0xce   :  { %350 = vrot.lane.b32.xlu0 %v1294_v28, %s1185_s0  ;;  %255 = vrot.lane.b32.xlu1 %v1311_v36, %s1185_s0 }
  0xcf   :  { %251 = vrot.lane.b32.xlu2 %v1290_v26, %s1185_s0 }
  0xd6   :  { %307 = vrot.lane.b32.xlu0 %v1340_v45, %s1185_s0  ;;  %303 = vrot.lane.b32.xlu1 %v1300_v31, %s1185_s0 }
  0xde   :  { %253 = vrot.lane.b32.xlu0 %v1298_v30, %s1185_s0 }
  0xe6   :  { %301 = vrot.lane.b32.xlu0 %v1292_v27, %s1185_s0 }
 0x108   :  { %v353_v46 = vpop.permute.xlu2 %352 }
 0x110   :  { %v402_v47 = vpop.permute.xlu2 %401 }
 0x119   :  { %v258_v48 = vpop.permute.xlu2 %257 }
 0x11a   :  { %1011 = vmatpush.xpose.msk.msrb.mxu0 %vm259_vm1, %v258_v48 }
 0x121   :  { %v306_v57 = vpop.permute.xlu2 %305 }
 0x128   :  { %v355_v49 = vpop.permute.xlu1 %354 }
 0x129   :  { %v252_v60 = vpop.permute.xlu2 %251 }
 0x130   :  { %v404_v50 = vpop.permute.xlu1 %403  ;;  %v357_v51 = vpop.permute.xlu0 %356 }
 0x131   :  { %1023 = vmatpush.xpose.msk.msrb.mxu2 %vm259_vm1, %v357_v51 }
 0x135   :  { %1024 = vmatpush.xpose.msk.msrb.mxu2 %vm259_vm1, %v355_v49 }
 0x138   :  { %v400_v52 = vpop.permute.xlu1 %399  ;;  %v406_v53 = vpop.permute.xlu0 %405 }
 0x139   :  { %1025 = vmatpush.xpose.msk.msrb.mxu2 %vm259_vm1, %v353_v46  ;;  %1029 = vmatpush.xpose.msk.msrb.mxu3 %vm259_vm1, %v406_v53 }
 0x13d   :  { %1030 = vmatpush.xpose.msk.msrb.mxu3 %vm259_vm1, %v404_v50 }
 0x140   :  { %v351_v54 = vpop.permute.xlu0 %350  ;;  %v256_v55 = vpop.permute.xlu1 %255 }
 0x141   :  { %1026 = vmatpush.xpose.msk.msrb.mxu2 %vm259_vm1, %v351_v54  ;;  %1031 = vmatpush.xpose.msk.msrb.mxu3 %vm259_vm1, %v402_v47  ;;  %v1078_v47 = vpack.i.bf16 %v1340_v45, %v1325_v42 }
 0x142   :  { %1012 = vmatpush.xpose.msk.msrb.mxu0 %vm259_vm1, %v256_v55 }
 0x144   :  { %1027 = vmatmul.msk.f32.vlgmr.msrb.gmra.mxu2 %vm259_vm1, %v1278_v20 }
 0x145   :  { %1032 = vmatpush.xpose.msk.msrb.mxu3 %vm259_vm1, %v400_v52 }
 0x148   :  { %1033 = vmatmul.msk.f32.vlgmr.msrb.gmra.mxu3 %vm259_vm1, %v1280_v21  ;;  %v308_v56 = vpop.permute.xlu0 %307  ;;  %v304_v58 = vpop.permute.xlu1 %303 }
 0x149   :  { %1017 = vmatpush.xpose.msk.msrb.mxu1 %vm259_vm1, %v308_v56 }
 0x14c   :  { %1028 = vmatmul.msk.f32.gmra.mxu2 %vm259_vm1, %v1286_v24 }
 0x14d   :  { %1018 = vmatpush.xpose.msk.msrb.mxu1 %vm259_vm1, %v306_v57 }
 0x150   :  { %1034 = vmatmul.msk.f32.gmra.mxu3 %vm259_vm1, %v1288_v25  ;;  %v254_v59 = vpop.permute.xlu0 %253 }
 0x151   :  { %1013 = vmatpush.xpose.msk.msrb.mxu0 %vm259_vm1, %v254_v59  ;;  %1019 = vmatpush.xpose.msk.msrb.mxu1 %vm259_vm1, %v304_v58 }
 0x155   :  { %1014 = vmatpush.xpose.msk.msrb.mxu0 %vm259_vm1, %v252_v60 }
 0x158   :  { %v302_v61 = vpop.permute.xlu0 %301  ;;  %1015 = vmatmul.msk.f32.vlgmr.msrb.gmra.mxu0 %vm259_vm1, %v1274_v18 }
 0x159   :  { %1020 = vmatpush.xpose.msk.msrb.mxu1 %vm259_vm1, %v302_v61 }
 0x15c   :  { %1021 = vmatmul.msk.f32.vlgmr.msrb.gmra.mxu1 %vm259_vm1, %v1276_v19 }
 0x160   :  { %1016 = vmatmul.msk.f32.gmra.mxu0 %vm259_vm1, %v1282_v22 }
 0x164   :  { %1022 = vmatmul.msk.f32.gmra.mxu1 %vm259_vm1, %v1284_v23 }
 0x1c7   :  { %v389_v2 = vpop.f32.mrf.mxu2 }
 0x1c8   :  { %v460_v25 = vsel %vm450_vm3, %v389_v2, %v448_v1  ;;  %v1063_v2 = vpack.i.bf16 %v1302_v32, %v1332_v44 }
 0x1c9   :  { %v476_v46 = vsel %vm52_vm0, %v460_v25, -inf }
 0x1cb   :  { %v438_v4 = vpop.f32.mrf.mxu3 }
 0x1cc   :  { %v462_v10 = vsel %vm450_vm3, %v438_v4, %v448_v1 }
 0x1cd   :  { %v482_v14 = vsel %vm52_vm0, %v462_v10, -inf }
 0x1cf   :  { %v392_v16 = vpop.f32.mrf.mxu2 }
 0x1d0   :  { %v461_v22 = vsel %vm451_vm5, %v392_v16, %v449_v12 }
 0x1d1   :  { %v479_v24 = vsel %vm52_vm0, %v461_v22, -inf }
 0x1d3   :  { %v441_v17 = vpop.f32.mrf.mxu3 }
 0x1d4   :  { %v463_v21 = vsel %vm451_vm5, %v441_v17, %v449_v12 }
 0x1d5   :  { %v291_v63 = vpop.f32.mrf.mxu0  ;;  %v485_v23 = vsel %vm52_vm0, %v463_v21, -inf }
 0x1d6   :  { %v456_v3 = vsel %vm450_vm3, %v291_v63, %v448_v1 }
 0x1d7   :  { %v464_v5 = vsel %vm52_vm0, %v456_v3, -inf }
 0x1d8   :  { %465 = vmax.xlane.f32.xlu2 %v464_v5  ;;  %v1058_v5 = vpack.i.bf16 %v1315_v38, %v1327_v43 }
 0x1d9   :  { %v340_v7 = vpop.f32.mrf.mxu1 }
 0x1da   :  { %v458_v8 = vsel %vm450_vm3, %v340_v7, %v448_v1  ;;  %v1093_v7 = vpack.i.bf16 %v1292_v27, %v1290_v26 }
 0x1db   :  { %v470_v9 = vsel %vm52_vm0, %v458_v8, -inf }
 0x1dc   :  { %471 = vmax.xlane.f32.xlu1 %v470_v9 }
 0x1dd   :  { %v294_v11 = vpop.f32.mrf.mxu0 }
 0x1de   :  { %v1389_v13 = vsel %vm451_vm5, %v294_v11, %v449_v12 }
 0x1df   :  { %v467_v15 = vsel %vm52_vm0, %v1389_v13, -inf }
 0x1e0   :  { %483 = vmax.xlane.f32.xlu2 %v482_v14  ;;  %468 = vmax.xlane.f32.xlu0 %v467_v15 }
 0x1e1   :  { %v343_v18 = vpop.f32.mrf.mxu1 }
 0x1e2   :  { %v1394_v19 = vsel %vm451_vm5, %v343_v18, %v449_v12 }
 0x1e3   :  { %v473_v20 = vsel %vm52_vm0, %v1394_v19, -inf }
 0x1e4   :  { %474 = vmax.xlane.f32.xlu1 %v473_v20 }
 0x1e8   :  { %486 = vmax.xlane.f32.xlu2 %v485_v23  ;;  %480 = vmax.xlane.f32.xlu0 %v479_v24 }
 0x1ec   :  { %477 = vmax.xlane.f32.xlu1 %v476_v46 }
 0x205   :  { %1069 = vrot.lane.b32.xlu1 %v1068_v41, %s1187_s1 }
 0x20d   :  { %1074 = vrot.lane.b32.xlu1 %v1073_v35, %s1187_s1 }
 0x215   :  { %1079 = vrot.lane.b32.xlu1 %v1078_v47, %s1187_s1 }
 0x21d   :  { %1084 = vrot.lane.b32.xlu1 %v1083_v40, %s1187_s1 }
 0x225   :  { %1089 = vrot.lane.b32.xlu1 %v1088_v34, %s1187_s1 }
 0x24b   :  { %v466_v28 = vpop.xlane.xlu2 %465 }
 0x24c   :  { %v488_v39 = vsub.f32 %v456_v3, %v466_v28 }
 0x24e   :  { %v496_v41 = vmul.f32 1.442695, %v488_v39 }
 0x24f   :  { %v472_v29 = vpop.xlane.xlu1 %471 }
 0x250   :  { %1098 = vpow2.f32 %v496_v41  ;;  %v490_v33 = vsub.f32 %v458_v8, %v472_v29 }
 0x252   :  { %v500_v35 = vmul.f32 1.442695, %v490_v33 }
 0x253   :  { %v484_v42 = vpop.xlane.xlu2 %483  ;;  %v469_v45 = vpop.xlane.xlu0 %468 }
 0x254   :  { %1100 = vpow2.f32 %v500_v35  ;;  %v494_v48 = vsub.f32 %v462_v10, %v484_v42  ;;  %v489_v44 = vsub.f32 %v1389_v13, %v469_v45 }
 0x256   :  { %v1421_v49 = vpop.eup %1098  ;;  %v508_v36 = vmul.f32 1.442695, %v494_v48  ;;  %v498_v38 = vmul.f32 1.442695, %v489_v44 }
 0x257   :  { %v475_v37 = vpop.xlane.xlu1 %474  ;;  %v512_v40 = vsel %vm52_vm0, %v1421_v49, 0.0 }
 0x258   :  { %513 = vadd.xlane.f32.xlu2 %v512_v40  ;;  %1102 = vpow2.f32 %v508_v36  ;;  %v491_v26 = vsub.f32 %v1394_v19, %v475_v37 }
 0x25a   :  { %v1425_v30 = vpop.eup %1100  ;;  %v502_v15 = vmul.f32 1.442695, %v491_v26 }
 0x25b   :  { %v481_v31 = vpop.xlane.xlu0 %480  ;;  %v518_v34 = vsel %vm52_vm0, %v1425_v30, 0.0  ;;  %v487_v50 = vpop.xlane.xlu2 %486 }
 0x25c   :  { %v493_v51 = vsub.f32 %v461_v22, %v481_v31  ;;  %519 = vadd.xlane.f32.xlu0 %v518_v34  ;;  %v495_v53 = vsub.f32 %v463_v21, %v487_v50 }
 0x25e   :  { %v506_v52 = vmul.f32 1.442695, %v493_v51  ;;  %v1429_v55 = vpop.eup %1102  ;;  %v510_v58 = vmul.f32 1.442695, %v495_v53 }
 0x25f   :  { %v478_v54 = vpop.xlane.xlu1 %477  ;;  %v530_v59 = vsel %vm52_vm0, %v1429_v55, 0.0 }
 0x260   :  { %v492_v56 = vsub.f32 %v460_v25, %v478_v54  ;;  %1104 = vpow2.f32 %v506_v52 }
 0x262   :  { %v504_v57 = vmul.f32 1.442695, %v492_v56 }
 0x264   :  { %1106 = vpow2.f32 %v504_v57  ;;  %531 = vadd.xlane.f32.xlu0 %v530_v59 }
 0x265   :  { %1108 = vpow2.f32 %v510_v58 }
 0x266   :  { %v1433_v60 = vpop.eup %1104  ;;  %1110 = vpow2.f32 %v498_v38 }
 0x267   :  { %v527_v61 = vsel %vm52_vm0, %v1433_v60, 0.0  ;;  %1112 = vpow2.f32 %v502_v15 }
 0x268   :  { %528 = vadd.xlane.f32.xlu1 %v527_v61 }
 0x26a   :  { %v1437_v62 = vpop.eup %1106 }
 0x26b   :  { %v524_v63 = vsel %vm52_vm0, %v1437_v62, 0.0  ;;  %v1441_v0 = vpop.eup %1108 }
 0x26c   :  { %525 = vadd.xlane.f32.xlu2 %v524_v63  ;;  %v533_v1 = vsel %vm52_vm0, %v1441_v0, 0.0  ;;  %v1460_v27 = vpop.eup %1110 }
 0x26d   :  { %v515_v16 = vsel %vm52_vm0, %v1460_v27, 0.0  ;;  %v1464_v13 = vpop.eup %1112 }
 0x26e   :  { %v521_v17 = vsel %vm52_vm0, %v1464_v13, 0.0 }
 0x270   :  { %534 = vadd.xlane.f32.xlu1 %v533_v1 }
 0x277   :  { %v1447_v3 = vpop.permute.xlu1 %1069 }
 0x278   :  { %1064 = vrot.lane.b32.xlu0 %v1063_v2, %s1187_s1  ;;  %v1072_v45 = vunpack.i.h.bf16 %v1447_v3  ;;  %v1071_v48 = vunpack.i.l.bf16 %v1447_v3 }
 0x27f   :  { %v1450_v4 = vpop.permute.xlu1 %1074 }
 0x280   :  { %v1077_v36 = vunpack.i.h.bf16 %v1450_v4 }
 0x284   :  { %1059 = vrot.lane.b32.xlu2 %v1058_v5, %s1187_s1 }
 0x287   :  { %v1080_v6 = vpop.permute.xlu1 %1079 }
 0x288   :  { %v1082_v8 = vunpack.i.h.bf16 %v1080_v6  ;;  %v1081_v9 = vunpack.i.l.bf16 %v1080_v6 }
 0x289   :  { %1094 = vrot.lane.b32.xlu1 %v1093_v7, %s1187_s1  ;;  %v1076_v7 = vunpack.i.l.bf16 %v1450_v4 }
 0x28a   :  { %686 = vmatpush.msra.mxu0 %v1081_v9  ;;  %727 = vmatpush.msra.mxu1 %v1082_v8 }
 0x28f   :  { %v1085_v32 = vpop.permute.xlu1 %1084 }
 0x290   :  { %v1087_v10 = vunpack.i.h.bf16 %v1085_v32  ;;  %v1086_v11 = vunpack.i.l.bf16 %v1085_v32 }
 0x292   :  { %687 = vmatpush.msra.mxu0 %v1086_v11  ;;  %728 = vmatpush.msra.mxu1 %v1087_v10 }
 0x297   :  { %v1090_v43 = vpop.permute.xlu1 %1089 }
 0x298   :  { %v1092_v12 = vunpack.i.h.bf16 %v1090_v43  ;;  %v1091_v14 = vunpack.i.l.bf16 %v1090_v43 }
 0x29a   :  { %688 = vmatpush.msra.mxu0 %v1091_v14  ;;  %729 = vmatpush.msra.mxu1 %v1092_v12 }
 0x2a2   :  { %516 = vadd.xlane.f32.xlu0 %v515_v16 }
 0x2ad   :  { %522 = vadd.xlane.f32.xlu2 %v521_v17 }
 0x2cb   :  { %v1470_v20 = vpop.xlane.xlu2 %513 }
 0x2cc   :  { %vm541_vm10 = vweird.f32 %v1470_v20 }
 0x2cf   :  { %v1468_v18 = vpop.xlane.xlu0 %519 }
 0x2d7   :  { %v532_v21 = vpop.xlane.xlu0 %531 }
 0x2d8   :  { %1114 = vrcp.f32 %v532_v21  ;;  %vm625_vm6 = vweird.f32 %v532_v21  ;;  %v629_v53 = vand.u32 2147483647, %v532_v21  ;;  %v631_v54 = vand.u32 2147483648, %v532_v21 }
 0x2d9   :  { %1116 = vrcp.f32 %v1470_v20 }
 0x2da   :  { %1118 = vrcp.f32 %v1468_v18  ;;  %vm630_vm11 = vcmp.eq.f32.partialorder %v629_v53, 8.507059e+37  ;;  %v632_v44 = vor.u32 1.1754944e-38, %v631_v54 }
 0x2db   :  { %v1474_v19 = vpop.xlane.xlu1 %528 }
 0x2dc   :  { %1120 = vrcp.f32 %v1474_v19  ;;  %v617_v15 = vand.u32 2147483648, %v1474_v19  ;;  %vm611_vm3 = vweird.f32 %v1474_v19 }
 0x2de   :  { %v1115_v22 = vpop.eup %1114 }
 0x2df   :  { %v621_v23 = vmul.f32 %v1115_v22, %v532_v21  ;;  %v526_v24 = vpop.xlane.xlu2 %525  ;;  %v1477_v25 = vpop.eup %1116  ;;  %vm626_vm7 = vweird.f32 %v1115_v22 }
 0x2e0   :  { %1122 = vrcp.f32 %v526_v24  ;;  %v1479_v47 = vpop.eup %1118  ;;  %v537_v39 = vmul.f32 %v1477_v25, %v1470_v20  ;;  %v601_v57 = vand.u32 2147483647, %v526_v24  ;;  %v603_v58 = vand.u32 2147483648, %v526_v24  ;;  %vm1497_vm9 = vmor %vm625_vm6, %vm626_vm7 }
 0x2e1   :  { %v622_v46 = vsub.f32 1.0, %v621_v23  ;;  %v565_v35 = vmul.f32 %v1479_v47, %v1468_v18  ;;  %vm597_vm12 = vweird.f32 %v526_v24  ;;  %v615_v23 = vand.u32 2147483647, %v1474_v19 }
 0x2e2   :  { %v1481_v28 = vpop.eup %1120  ;;  %v538_v37 = vsub.f32 1.0, %v537_v39  ;;  %vm602_vm14 = vcmp.eq.f32.partialorder %v601_v57, 8.507059e+37  ;;  %v604_v38 = vor.u32 1.1754944e-38, %v603_v58  ;;  %vm542_vm6 = vweird.f32 %v1477_v25 }
 0x2e3   :  { %v623_v41 = vmul.f32 %v1115_v22, %v622_v46  ;;  %v607_v29 = vmul.f32 %v1481_v28, %v1474_v19  ;;  %v1487_v33 = vpop.xlane.xlu1 %534  ;;  %v566_v52 = vsub.f32 1.0, %v565_v35  ;;  %vm612_vm15 = vweird.f32 %v1481_v28 }
 0x2e4   :  { %1124 = vrcp.f32 %v1487_v33  ;;  %v539_v8 = vmul.f32 %v1477_v25, %v538_v37  ;;  %v645_v21 = vand.u32 2147483648, %v1487_v33  ;;  %vm639_vm4 = vweird.f32 %v1487_v33  ;;  %vm1522_vm5 = vmor %vm611_vm3, %vm612_vm15 }
 0x2e5   :  { %v608_v40 = vsub.f32 1.0, %v607_v29  ;;  %v624_v50 = vadd.f32 %v1115_v22, %v623_v41  ;;  %v567_v11 = vmul.f32 %v1479_v47, %v566_v52  ;;  %v643_v41 = vand.u32 2147483647, %v1487_v33 }
 0x2e6   :  { %v1123_v42 = vpop.eup %1122  ;;  %v545_v29 = vand.u32 2147483647, %v1470_v20  ;;  %vm570_vm7 = vweird.f32 %v1479_v47  ;;  %v540_v19 = vadd.f32 %v1477_v25, %v539_v8  ;;  %v618_v35 = vor.u32 1.1754944e-38, %v617_v15  ;;  %v820_v15 = vld [vmem:[%s1618_s3] sm:$0xff] }
 0x2e7   :  { %v593_v31 = vmul.f32 %v1123_v42, %v526_v24  ;;  %v1060_v34 = vpop.permute.xlu2 %1059  ;;  %vm598_vm8 = vweird.f32 %v1123_v42  ;;  %v609_v2 = vmul.f32 %v1481_v28, %v608_v40  ;;  %v628_v9 = vsel %vm1497_vm9, %v1115_v22, %v624_v50 }
 0x2e8   :  { %v1061_v51 = vunpack.i.l.bf16 %v1060_v34  ;;  %v1062_v59 = vunpack.i.h.bf16 %v1060_v34  ;;  %vm599_vm13 = vmor %vm597_vm12, %vm598_vm8  ;;  %v633_v12 = vsel %vm630_vm11, %v632_v44, %v628_v9  ;;  %vm616_vm9 = vcmp.eq.f32.partialorder %v615_v23, 8.507059e+37 }
 0x2e9   :  { %v594_v56 = vsub.f32 1.0, %v593_v31  ;;  %v610_v26 = vadd.f32 %v1481_v28, %v609_v2  ;;  %v654_v24 = vmul.f32 %v1429_v55, %v633_v12  ;;  %vm1555_vm11 = vmor %vm541_vm10, %vm542_vm6  ;;  %vm569_vm12 = vweird.f32 %v1468_v18 }
 0x2ea   :  { %768 = vmatpush.msra.mxu2 %v1061_v51  ;;  %v1065_v61 = vpop.permute.xlu0 %1064  ;;  %v1495_v63 = vpop.eup %1124  ;;  %v544_v31 = vsel %vm1555_vm11, %v1477_v25, %v540_v19  ;;  %vm546_vm10 = vcmp.eq.f32.partialorder %v545_v29, 8.507059e+37 }
 0x2eb   :  { %v595_v3 = vmul.f32 %v1123_v42, %v594_v56  ;;  %v1067_v5 = vunpack.i.h.bf16 %v1065_v61  ;;  %v1066_v6 = vunpack.i.l.bf16 %v1065_v61  ;;  %v635_v32 = vmul.f32 %v1495_v63, %v1487_v33 }
 0x2ec   :  { %769 = vmatpush.msra.mxu2 %v1062_v59  ;;  %vm640_vm2 = vweird.f32 %v1495_v63  ;;  %v614_v55 = vsel %vm1522_vm5, %v1481_v28, %v610_v26  ;;  %v568_v33 = vadd.f32 %v1479_v47, %v567_v11  ;;  %v575_v28 = vand.u32 2147483648, %v1468_v18  ;;  %v823_v26 = vld [vmem:[%s1618_s3 + $0x18] sm:$0xff] }
 0x2ed   :  { %v596_v10 = vadd.f32 %v1123_v42, %v595_v3  ;;  %809 = vmatpush.msra.mxu3 %v1066_v6  ;;  %v636_v43 = vsub.f32 1.0, %v635_v32  ;;  %vm1539_vm8 = vmor %vm639_vm4, %vm640_vm2  ;;  %v619_v37 = vsel %vm616_vm9, %v618_v35, %v614_v55 }
 0x2ee   :  { %770 = vmatpush.msra.mxu2 %v1067_v5  ;;  %v576_v50 = vor.u32 1.1754944e-38, %v575_v28  ;;  %v653_v51 = vmul.f32 %v1433_v60, %v619_v37 }
 0x2ef   :  { %v600_v14 = vsel %vm599_vm13, %v1123_v42, %v596_v10  ;;  %810 = vmatpush.msra.mxu3 %v1071_v48  ;;  %v637_v17 = vmul.f32 %v1495_v63, %v636_v43  ;;  %v547_v42 = vand.u32 2147483648, %v1470_v20  ;;  %vm644_vm13 = vcmp.eq.f32.partialorder %v643_v41, 8.507059e+37 }
 0x2f0   :  { %v605_v16 = vsel %vm602_vm14, %v604_v38, %v600_v14  ;;  %771 = vmatpush.msra.mxu2 %v1072_v45  ;;  %v646_v45 = vor.u32 1.1754944e-38, %v645_v21  ;;  %vm571_vm14 = vmor %vm569_vm12, %vm570_vm7 }
 0x2f1   :  { %811 = vmatpush.msra.mxu3 %v1076_v7  ;;  %v652_v22 = vmul.f32 %v1437_v62, %v605_v16  ;;  %v638_v39 = vadd.f32 %v1495_v63, %v637_v17  ;;  %v572_v20 = vsel %vm571_vm14, %v1479_v47, %v568_v33  ;;  %v548_v34 = vor.u32 1.1754944e-38, %v547_v42 }
 0x2f3   :  { %1039 = vmatmul.msk.f32.vlgmr.msra.gmra.mxu2 %vm52_vm0, %v652_v22  ;;  %812 = vmatpush.msra.mxu3 %v1077_v36  ;;  %v642_v4 = vsel %vm1539_vm8, %v1495_v63, %v638_v39  ;;  %v573_v36 = vand.u32 2147483647, %v1468_v18  ;;  %v549_v52 = vsel %vm546_vm10, %v548_v34, %v544_v31 }
 0x2f4   :  { %1041 = vmatmul.msk.f32.vlgmr.msra.gmra.mxu3 %vm52_vm0, %v654_v24  ;;  %v647_v40 = vsel %vm644_vm13, %v646_v45, %v642_v4  ;;  %v648_v25 = vmul.f32 %v1421_v49, %v549_v52 }
 0x2f5   :  { %vm574_vm15 = vcmp.eq.f32.partialorder %v573_v36, 8.507059e+37  ;;  %v655_v18 = vmul.f32 %v1441_v0, %v647_v40  ;;  %932 = vmatpush.msrb.mxu3 %v823_v26 }
 0x2f6   :  { %v577_v53 = vsel %vm574_vm15, %v576_v50, %v572_v20 }
 0x2f7   :  { %v650_v47 = vmul.f32 %v1425_v30, %v577_v53 }
 0x2fb   :  { %1040 = vmatmul.msk.f32.gmra.mxu2 %vm52_vm0, %v653_v51  ;;  %v1095_v54 = vpop.permute.xlu1 %1094 }
 0x2fc   :  { %1042 = vmatmul.msk.f32.gmra.mxu3 %vm52_vm0, %v655_v18  ;;  %v1097_v56 = vunpack.i.h.bf16 %v1095_v54  ;;  %v1096_v57 = vunpack.i.l.bf16 %v1095_v54 }
 0x2fe   :  { %689 = vmatpush.msra.mxu0 %v1096_v57  ;;  %730 = vmatpush.msra.mxu1 %v1097_v56 }
 0x2ff   :  { %1035 = vmatmul.msk.f32.vlgmr.msra.gmra.mxu0 %vm52_vm0, %v648_v25  ;;  %1037 = vmatmul.msk.f32.vlgmr.msra.gmra.mxu1 %vm52_vm0, %v650_v47 }
 0x300   :  { %845 = vmatpush.msrb.mxu0 %v820_v15 }
 0x315   :  { %v517_v60 = vpop.xlane.xlu0 %516 }
 0x316   :  { %1126 = vrcp.f32 %v517_v60  ;;  %v561_v61 = vand.u32 2147483648, %v517_v60  ;;  %v559_v2 = vand.u32 2147483647, %v517_v60  ;;  %vm555_vm3 = vweird.f32 %v517_v60 }
 0x318   :  { %v562_v30 = vor.u32 1.1754944e-38, %v561_v61  ;;  %vm560_vm5 = vcmp.eq.f32.partialorder %v559_v2, 8.507059e+37 }
 0x31c   :  { %v1127_v0 = vpop.eup %1126 }
 0x31d   :  { %v551_v58 = vmul.f32 %v1127_v0, %v517_v60  ;;  %vm556_vm2 = vweird.f32 %v1127_v0 }
 0x31e   :  { %vm557_vm4 = vmor %vm555_vm3, %vm556_vm2 }
 0x31f   :  { %v552_v59 = vsub.f32 1.0, %v551_v58 }
 0x320   :  { %v523_v63 = vpop.xlane.xlu2 %522 }
 0x321   :  { %v553_v1 = vmul.f32 %v1127_v0, %v552_v59  ;;  %1128 = vrcp.f32 %v523_v63  ;;  %v589_v32 = vand.u32 2147483648, %v523_v63  ;;  %v587_v10 = vand.u32 2147483647, %v523_v63 }
 0x322   :  { %vm583_vm7 = vweird.f32 %v523_v63 }
 0x323   :  { %v554_v49 = vadd.f32 %v1127_v0, %v553_v1  ;;  %v590_v38 = vor.u32 1.1754944e-38, %v589_v32  ;;  %vm588_vm9 = vcmp.eq.f32.partialorder %v587_v10, 8.507059e+37 }
 0x325   :  { %v558_v3 = vsel %vm557_vm4, %v1127_v0, %v554_v49 }
 0x326   :  { %v563_v5 = vsel %vm560_vm5, %v562_v30, %v558_v3 }
 0x327   :  { %v1129_v6 = vpop.eup %1128  ;;  %v649_v7 = vmul.f32 %v1460_v27, %v563_v5  ;;  %v822_v27 = vld [vmem:[%s1618_s3 + $0x10] sm:$0xff] }
 0x328   :  { %v579_v8 = vmul.f32 %v1129_v6, %v523_v63  ;;  %vm584_vm6 = vweird.f32 %v1129_v6  ;;  %903 = vmatpush.msrb.mxu2 %v822_v27 }
 0x329   :  { %1036 = vmatmul.msk.f32.gmra.mxu0 %vm52_vm0, %v649_v7  ;;  %vm585_vm8 = vmor %vm583_vm7, %vm584_vm6 }
 0x32a   :  { %v580_v9 = vsub.f32 1.0, %v579_v8 }
 0x32c   :  { %v581_v44 = vmul.f32 %v1129_v6, %v580_v9 }
 0x32e   :  { %v582_v11 = vadd.f32 %v1129_v6, %v581_v44 }
 0x330   :  { %v586_v43 = vsel %vm585_vm8, %v1129_v6, %v582_v11 }
 0x331   :  { %v591_v12 = vsel %vm588_vm9, %v590_v38, %v586_v43 }
 0x332   :  { %v651_v14 = vmul.f32 %v1464_v13, %v591_v12  ;;  %v821_v13 = vld [vmem:[%s1618_s3 + $0x8] sm:$0xff]  ;;  %s1188_s3 = smov [#allocation5]  }
 0x333   :  { %874 = vmatpush.msrb.mxu1 %v821_v13  ;;  %s960_s19 = sshll.u32 %s1188_s3, 4  ;;  %s961_s19 = int_to_ptr.vmem [resolvable:$true] %s960_s19 }
 0x334   :  { %1038 = vmatmul.msk.f32.gmra.mxu1 %vm52_vm0, %v651_v14 }
 0x376   :  { %v773_v16 = vpop.f32.mrf.mxu2 }
 0x377   :  { %v814_v17 = vpop.f32.mrf.mxu3  ;;  %1047 = vmatmul.msk.f32.vlgmr.msrb.gmra.mxu2 %vm259_vm1, %v773_v16 }
 0x378   :  { %1049 = vmatmul.msk.f32.vlgmr.msrb.gmra.mxu3 %vm259_vm1, %v814_v17 }
 0x37c   :  { %v691_v21 = vpop.f32.mrf.mxu0  ;;  %v732_v22 = vpop.f32.mrf.mxu1 }
 0x37d   :  { %1043 = vmatmul.msk.f32.vlgmr.msrb.gmra.mxu0 %vm259_vm1, %v691_v21  ;;  %1045 = vmatmul.msk.f32.vlgmr.msrb.gmra.mxu1 %vm259_vm1, %v732_v22 }
 0x37e   :  { %v776_v23 = vpop.f32.mrf.mxu2 }
 0x37f   :  { %v817_v24 = vpop.f32.mrf.mxu3  ;;  %1048 = vmatmul.msk.f32.gmra.mxu2 %vm259_vm1, %v776_v23 }
 0x380   :  { %1050 = vmatmul.msk.f32.gmra.mxu3 %vm259_vm1, %v817_v24 }
 0x3a6   :  { %v694_v46 = vpop.f32.mrf.mxu0 }
 0x3a7   :  { %1044 = vmatmul.msk.f32.gmra.mxu0 %vm259_vm1, %v694_v46 }
 0x3b1   :  { %v735_v39 = vpop.f32.mrf.mxu1 }
 0x3b2   :  { %1046 = vmatmul.msk.f32.gmra.mxu1 %vm259_vm1, %v735_v39 }
 0x3fa   :  { %v905_v41 = vpop.f32.mrf.mxu2  ;;  %v847_v29 = vpop.f32.mrf.mxu0 }
 0x3fb   :  { %v876_v55 = vpop.f32.mrf.mxu1  ;;  %v940_v62 = vsel %vm52_vm0, %v847_v29, 0.0  ;;  %v934_v35 = vpop.f32.mrf.mxu3  ;;  %v943_v4 = vsel %vm52_vm0, %v905_v41, 0.0 }
 0x3fc   :  { %v941_v19 = vsel %vm52_vm0, %v876_v55, 0.0  ;;  %v945_v28 = vsel %vm52_vm0, %v934_v35, 0.0 }
 0x3fd   :  { %v942_v33 = vadd.f32 %v941_v19, %v940_v62 }
 0x3ff   :  { %v944_v42 = vadd.f32 %v943_v4, %v942_v33 }
 0x401   :  { %v946_v45 = vadd.f32 %v945_v28, %v944_v42 }
 0x402   :  { %v908_v36 = vpop.f32.mrf.mxu2 }
 0x403   :  { %954 = vst.msk [vmem:[#allocation5] sm:$0xff] %vm52_vm0, %v946_v45  ;;  %v937_v20 = vpop.f32.mrf.mxu3  ;;  %v950_v50 = vsel %vm52_vm0, %v908_v36, 0.0 }
 0x404   :  { %v952_v18 = vsel %vm52_vm0, %v937_v20, 0.0 }
 0x424   :  { %v850_v48 = vpop.f32.mrf.mxu0 }
 0x425   :  { %v947_v40 = vsel %vm52_vm0, %v850_v48, 0.0 }
 0x42f   :  { %v879_v37 = vpop.f32.mrf.mxu1 }
 0x430   :  { %v948_v31 = vsel %vm52_vm0, %v879_v37, 0.0 }
 0x431   :  { %v949_v34 = vadd.f32 %v948_v31, %v947_v40 }
 0x433   :  { %v951_v51 = vadd.f32 %v950_v50, %v949_v34 }
 0x435   :  { %v953_v52 = vadd.f32 %v952_v18, %v951_v51 }
 0x437   :  { %955 = vst.msk [vmem:[#allocation5 + $0x8] sm:$0xff] %vm52_vm0, %v953_v52 }
 0x438   :  { %968 = dma.vmem_to_hbm [thread:$0]  %s961_s19, 256, %s963_s23, [#allocation4], %s1183_s20, %s1183_s20, %s1184_s21  }
 0x439   :  { %1180 = dma.done.wait [#allocation4], 256  }
 0x43a   :  { %1181 = vsyncadd [#allocation4], 4294967040 }
 0x43b   :  { %973 = vsyncpa [#allocation3], 1 }
 0x43c   :  { %974 = vsyncpa [#allocation4], 1 }

</bundles_post_ra>
